<compile_context>
chip_gen: v7x
topology: tpu7x:2x2x1
jax: 0.10.0
libtpu: 0.0.40
codegen_flags: <defaults>
</compile_context>

<pallas_src>
import numpy as np

import jax
import jax.numpy as jnp
from jax.experimental import pallas as pl
from jax.experimental.pallas import tpu as pltpu


def _integral_average_kernel(x_ref, w_ref, o_ref):
    x = x_ref[...].astype(jnp.float32)                 # (tile_n, 4*bins)
    w = w_ref[...]                                     # (4*bins, 8), f32

    # One MXU matmul computes all 4 segment numerators and 4 denominators.
    # Column order of w is [n0, n2, n1, n3, d0, d2, d1, d3] (see wrapper), so
    # the pairwise sum below reduces to two contiguous 2-lane slices.
    r = jnp.dot(x, w, preferred_element_type=jnp.float32)   # (tile_n, 8)

    num = r[:, 0:4]                                    # [n0, n2, n1, n3]
    den = r[:, 4:8]                                    # [d0, d2, d1, d3]

    inv = pl.reciprocal(den, approx=True)              # EUP slot (free here)
    inv = inv * (2.0 - den * inv)                      # one Newton step -> ~exact
    e = num * inv                                      # [e0, e2, e1, e3]

    # out[:,0] = e0 + e1 ; out[:,1] = e2 + e3
    o_ref[...] = (e[:, 0:2] + e[:, 2:4]).astype(o_ref.dtype)


def _round_up(v: int, m: int) -> int:
    return ((v + m - 1) // m) * m


def integral_average(x: jax.Array, reg_max: int = 16,
                     tile_n: int = 8192) -> jax.Array:
    """x: (N, 4*(reg_max+1)) float array -> (N, 2)."""
    n, feat = x.shape
    bins = reg_max + 1
    assert feat == 4 * bins, "feature dim must be 4*(reg_max+1)"

    # Constant weight matrix (feat, 8):
    #   column c (c<4):  indicator(segment == perm[c]) * space
    #   column 4+c:      indicator(segment == perm[c])
    # perm = (0, 2, 1, 3) so the kernel's pairwise sum uses contiguous slices.
    space = np.arange(bins, dtype=np.float32) / float(reg_max) / 2.0
    w_np = np.zeros((feat, 8), dtype=np.float32)
    for c, s in enumerate((0, 2, 1, 3)):
        w_np[s * bins:(s + 1) * bins, c] = space
        w_np[s * bins:(s + 1) * bins, 4 + c] = 1.0
    w = jnp.asarray(w_np)

    # Tile over N (multiple of 8 for sublane alignment); pad the tail.
    tile = min(tile_n, _round_up(max(n, 1), 8))
    tile = _round_up(tile, 8)
    n_tiles = pl.cdiv(n, tile)
    n_pad = n_tiles * tile
    x_p = x
    if n_pad != n:
        # Pad with 1.0 so padded-row denominators are finite (rows discarded).
        x_p = jnp.pad(x, ((0, n_pad - n), (0, 0)), constant_values=1.0)

    out = pl.pallas_call(
        _integral_average_kernel,
        out_shape=jax.ShapeDtypeStruct((n_pad, 2), x.dtype),
        grid=(n_tiles,),
        in_specs=[
            pl.BlockSpec((tile, feat), lambda i: (i, 0)),
            pl.BlockSpec((feat, 8), lambda i: (0, 0)),   # constant W, resident
        ],
        out_specs=pl.BlockSpec((tile, 2), lambda i: (i, 0)),
        compiler_params=pltpu.CompilerParams(
            dimension_semantics=("parallel",)),
    )(x_p, w)

    return out[:n] if n_pad != n else out


def _reference(x: jax.Array, reg_max: int = 16) -> jax.Array:
    """Pure-JAX reference mirroring the PyTorch forward exactly."""
    bins = reg_max + 1
    xr = x.reshape(-1, bins)
    xr = xr / jnp.sum(xr, axis=1, keepdims=True)
    space = jnp.linspace(0.0, reg_max, bins, dtype=x.dtype) / reg_max / 2.0
    xr = xr * space
    return jnp.sum(xr, axis=1).reshape(-1, 2, 2).sum(axis=2)


if __name__ == "__main__":
    reg_max = 16
    key = jax.random.PRNGKey(0)

    # Small primary case (matches the module's expected usage).
    n = 8
    x = jax.random.uniform(key, (n, 4 * (reg_max + 1)), dtype=jnp.float32,
                           minval=0.1, maxval=1.0)
    out = integral_average(x, reg_max=reg_max)
    out = jax.block_until_ready(out)
    ref = _reference(x, reg_max=reg_max)
    assert out.shape == (n, 2), out.shape
    assert jnp.allclose(out, ref, atol=1e-5, rtol=1e-5), (out, ref)

    # Secondary case: multiple tiles + non-divisible tail (exercises padding).
    n2 = 1000
    key2 = jax.random.PRNGKey(1)
    x2 = jax.random.uniform(key2, (n2, 4 * (reg_max + 1)), dtype=jnp.float32,
                            minval=0.1, maxval=1.0)
    out2 = integral_average(x2, reg_max=reg_max, tile_n=256)
    out2 = jax.block_until_ready(out2)
    ref2 = _reference(x2, reg_max=reg_max)
    assert out2.shape == (n2, 2), out2.shape
    assert jnp.allclose(out2, ref2, atol=1e-5, rtol=1e-5)

    print("KERNEL_OK")
</pallas_src>

<mosaic_0001>
module attributes {stable_mosaic.version = 11 : i64} {
  func.func @_integral_average_kernel(%arg0: i32, %arg1: memref<8x68xf32, #tpu.memory_space<vmem>>, %arg2: memref<68x8xf32, #tpu.memory_space<vmem>>, %arg3: memref<8x2xf32, #tpu.memory_space<vmem>>) attributes {dimension_semantics = [#tpu.dimension_semantics<parallel>], iteration_bounds = array<i64: 1>, scalar_prefetch = 0 : i64, scratch_operands = 0 : i64, tpu.core_type = #tpu.core_type<tc>, window_params = [{transform_indices = @transform_0, window_bounds = array<i64: 8, 68>}, {pipeline_mode = #tpu.pipeline_mode<synchronous>, transform_indices = @transform_1, window_bounds = array<i64: 68, 8>}, {transform_indices = @transform_2, window_bounds = array<i64: 8, 2>}]} {
    %c0 = arith.constant 0 : index
    %c0_0 = arith.constant 0 : index
    %0 = vector.load %arg1[%c0, %c0_0] : memref<8x68xf32, #tpu.memory_space<vmem>>, vector<8x68xf32>
    %c0_1 = arith.constant 0 : index
    %c0_2 = arith.constant 0 : index
    %1 = vector.load %arg2[%c0_1, %c0_2] : memref<68x8xf32, #tpu.memory_space<vmem>>, vector<68x8xf32>
    %cst = arith.constant dense<0.000000e+00> : vector<8x8xf32>
    %2 = tpu.matmul %0, %1, %cst {dimension_numbers = #tpu.dot_dimension_numbers<[1], [0], [0], [1], [0, 0, 1, 1], [], []>} : vector<8x68xf32>, vector<68x8xf32>, vector<8x8xf32> -> vector<8x8xf32>
    %3 = vector.extract_strided_slice %2 {offsets = [0, 0], sizes = [8, 4], strides = [1, 1]} : vector<8x8xf32> to vector<8x4xf32>
    %4 = vector.extract_strided_slice %2 {offsets = [0, 4], sizes = [8, 4], strides = [1, 1]} : vector<8x8xf32> to vector<8x4xf32>
    %5 = tpu.reciprocal %4 {approx = true} : vector<8x4xf32> -> vector<8x4xf32>
    %6 = arith.mulf %4, %5 : vector<8x4xf32>
    %cst_3 = arith.constant 2.000000e+00 : f32
    %7 = vector.broadcast %cst_3 : f32 to vector<8x4xf32>
    %8 = arith.subf %7, %6 : vector<8x4xf32>
    %9 = arith.mulf %5, %8 : vector<8x4xf32>
    %10 = arith.mulf %3, %9 : vector<8x4xf32>
    %11 = vector.extract_strided_slice %10 {offsets = [0, 0], sizes = [8, 2], strides = [1, 1]} : vector<8x4xf32> to vector<8x2xf32>
    %12 = vector.extract_strided_slice %10 {offsets = [0, 2], sizes = [8, 2], strides = [1, 1]} : vector<8x4xf32> to vector<8x2xf32>
    %13 = arith.addf %11, %12 : vector<8x2xf32>
    %c0_4 = arith.constant 0 : index
    %c0_5 = arith.constant 0 : index
    %14 = vector.load %arg3[%c0_4, %c0_5] : memref<8x2xf32, #tpu.memory_space<vmem>>, vector<8x2xf32>
    tpu.vector_store %arg3[%c0_4, %c0_5], %13 {strides = array<i32>} : memref<8x2xf32, #tpu.memory_space<vmem>>, vector<8x2xf32>,
    return
  }
  func.func @transform_0(%arg0: i32) -> (i32, i32) {
    %c0_i32 = arith.constant 0 : i32
    %c0_i32_0 = arith.constant 0 : i32
    return %arg0, %c0_i32 : i32, i32
  }
  func.func @transform_1(%arg0: i32) -> (i32, i32) {
    %c0_i32 = arith.constant 0 : i32
    %c0_i32_0 = arith.constant 0 : i32
    %c0_i32_1 = arith.constant 0 : i32
    return %c0_i32, %c0_i32_0 : i32, i32
  }
  func.func @transform_2(%arg0: i32) -> (i32, i32) {
    %c0_i32 = arith.constant 0 : i32
    %c0_i32_0 = arith.constant 0 : i32
    return %arg0, %c0_i32 : i32, i32
  }
}

</mosaic_0001>

<bundles_post_ra>
// kernel: tpu_custom_call.1
= control target key start
LH: loop header
LB: loop body
LE: loop exit
PB: predicated region body
PF: predicated region fallthrough
CT: control target
= control target key end

     0   :  { %v171_v0 = vmov 0.0|0.0   ;;  %vm172_vm0 = vmmov 0   ;;  %v173_v4 = vmov 0.0   ;;  %vm25_vm1 = vcmask 1043456   ;;  %s174_s29 = smov 124   ;;  %s224_s1 = inlined_call_operand.vmem [shape: f32[68,8], index: 1, kind: input, shape index: {}]   ;;  %s225_s0 = inlined_call_operand.vmem [shape: f32[8,68], index: 0, kind: input, shape index: {}]   ;;  %s226_s2 = inlined_call_operand.vmem [shape: f32[8,2], index: 2, kind: output, shape index: {}]  }
   0x1   :  { %152 = vmatprep.subr.bf16.mxu0 %v171_v0  ;;  %v12_v1 = vld [vmem:[%s224_s1] sm:$0xff]  ;;  %v13_v2 = vld [vmem:[%s224_s1 + $0x8] sm:$0xff]  ;;  %v14_v3 = vld [vmem:[%s224_s1 + $0x10] sm:$0xff]  ;;  %149 = vmatprep.mubr.msk.f32.mxu0 %vm172_vm0, %v173_v4  ;;  %vm21_vm2 = vcmask 556032   ;;  %vm113_vm3 = vcmask 15360  }
   0x2   :  { %v153_v5 = vpack.c.bf16 %v13_v2, %v12_v1  ;;  %v15_v6 = vld [vmem:[%s224_s1 + $0x18] sm:$0xff]  ;;  %v16_v8 = vld [vmem:[%s224_s1 + $0x20] sm:$0xff]  ;;  %v17_v9 = vld [vmem:[%s224_s1 + $0x28] sm:$0xff] }
   0x3   :  { %v156_v7 = vpack.c.bf16 %v15_v6, %v14_v3  ;;  %v159_v10 = vpack.c.bf16 %v17_v9, %v16_v8  ;;  %v18_v11 = vld [vmem:[%s224_s1 + $0x30] sm:$0xff]  ;;  %v19_v12 = vld [vmem:[%s224_s1 + $0x38] sm:$0xff]  ;;  %v20_v14 = vld [vmem:[%s224_s1 + $0x40] sm:$0xf]  ;;  %s175_s1 = smov 126  }
   0x4   :  { %154 = vmatpush3.bf16.msra.mxu0 %v153_v5  ;;  %v162_v13 = vpack.c.bf16 %v19_v12, %v18_v11  ;;  %v11_v15 = vld [vmem:[%s225_s0] sm:$0xff] }
   0x5   :  { %155 = vmatprep.subr.bf16.mxu0 %v171_v0 }
   0x8   :  { %157 = vmatpush3.bf16.msra.mxu0 %v156_v7 }
   0x9   :  { %158 = vmatprep.subr.bf16.mxu0 %v171_v0 }
   0xc   :  { %160 = vmatpush3.bf16.msra.mxu0 %v159_v10 }
   0xd   :  { %161 = vmatprep.subr.bf16.mxu0 %v171_v0 }
  0x10   :  { %163 = vmatpush3.bf16.msra.mxu0 %v162_v13 }
  0x11   :  { %147 = vmatprep.subr.mxu0 %v173_v4 }
  0x14   :  { %148 = vmatpush3.msk.msra.mxu0 %vm25_vm1, %v20_v14 }
  0x15   :  { %150 = vmatmul.mubr.msk.f32.vlgmr.msra.gmra.mrb[0].mxu0 %vm21_vm2, %v11_v15 }
  0xe8   :  { %v95_v16 = vpop.f32.mrb[0].mxu0 }
  0xe9   :  { %169 = vrcp.f32 %v95_v16  ;;  %v151_v17 = vpop.f32.mrb[1].mxu0 }
  0xf3   :  { %v170_v18 = vpop.eup %169 }
  0xf4   :  { %v100_v19 = vmul.f32 %v170_v18, %v95_v16 }
  0xf6   :  { %v101_v20 = vsub.f32 2.0, %v100_v19 }
  0xf8   :  { %v102_v21 = vmul.f32 %v170_v18, %v101_v20 }
  0xfa   :  { %104 = vrot.lane.b32.xlu0 %v102_v21, %s174_s29 }
 0x16c   :  { %v105_v22 = vpop.permute.xlu0 %104 }
 0x16d   :  { %v107_v23 = vmul.f32 %v105_v22, %v95_v16 }
 0x16f   :  { %109 = vrot.lane.b32.xlu0 %v107_v23, %s175_s1 }
 0x1e1   :  { %v110_v24 = vpop.permute.xlu0 %109 }
 0x1e2   :  { %v112_v25 = vadd.f32 %v110_v24, %v107_v23 }
 0x1e4   :  { %114 = vst.msk [vmem:[%s226_s2] sm:$0xff] %vm113_vm3, %v112_v25 }

</bundles_post_ra>
